<compile_context>
chip_gen: v6e
topology: v6e:2x2x1
jax: 0.10.0
libtpu: 0.0.40
codegen_flags: <defaults>
</compile_context>

<pallas_src>
import functools

import jax
import jax.numpy as jnp
from jax.experimental import pallas as pl
from jax.experimental.pallas import tpu as pltpu


# ------------------------------------------------------------------
# Fused SKAttention kernel (one grid step per batch element)
# ------------------------------------------------------------------
def _sk_attention_kernel(p_ref, w_ref, b_ref, wfc_ref, bfc_ref,
                         wfcs_ref, bfcs_ref, out_ref, *, K, C, inv_hw):
    # --- all K conv branches in ONE matmul: [K*C, TAPS] x [TAPS, HW] ---------
    raw = jnp.dot(w_ref[...], p_ref[0],
                  preferred_element_type=jnp.float32)          # [K*C, HW] f32
    feats = jnp.maximum(raw + b_ref[...], 0.0)                 # bias(+BN) + ReLU

    # --- U = sum over branches, global average pool -> S [C, 1] --------------
    u = feats[0:C]
    for i in range(1, K):
        u = u + feats[i * C:(i + 1) * C]
    s = jnp.sum(u, axis=-1, keepdims=True) * inv_hw            # [C, 1]

    # --- squeeze/excite chain (tiny, stays in registers) ---------------------
    z = jnp.dot(wfc_ref[...], s,
                preferred_element_type=jnp.float32) + bfc_ref[...]      # [d, 1]
    logits = jnp.dot(wfcs_ref[...], z,
                     preferred_element_type=jnp.float32) + bfcs_ref[...]  # [K*C, 1]

    # --- softmax over branches (per channel) via static branch slices --------
    m = logits[0:C]
    for i in range(1, K):
        m = jnp.maximum(m, logits[i * C:(i + 1) * C])
    exps = [jnp.exp(logits[i * C:(i + 1) * C] - m) for i in range(K)]
    denom = exps[0]
    for i in range(1, K):
        denom = denom + exps[i]
    inv = 1.0 / denom                                           # [C, 1]

    # --- V = sum_k attn_k * feats_k ------------------------------------------
    v = feats[0:C] * (exps[0] * inv)
    for i in range(1, K):
        v = v + feats[i * C:(i + 1) * C] * (exps[i] * inv)
    out_ref[0] = v.astype(out_ref.dtype)


# ------------------------------------------------------------------
# Wrapper: im2col + weight packing in JAX, one pallas_call
# ------------------------------------------------------------------
def sk_attention_forward(x, params, kernels=(1, 3, 5, 7), eps_bn=1e-5,
                         matmul_dtype=jnp.bfloat16):
    B, C, H, W = x.shape
    K = len(kernels)
    kmax = max(kernels)
    pmax = kmax // 2
    HW = H * W                      # lane-dense when H*W is a multiple of 128
    TAPS = C * kmax * kmax
    d = params["fc_w"].shape[0]

    # ---- im2col outside the kernel: shared 7x7 halo, [B, TAPS, HW] ----------
    xpad = jnp.pad(x, ((0, 0), (0, 0), (pmax, pmax), (pmax, pmax)))
    taps = []
    for ty in range(kmax):
        for tx in range(kmax):
            taps.append(xpad[:, :, ty:ty + H, tx:tx + W])       # [B, C, H, W]
    patches = jnp.stack(taps, axis=2)                           # [B, C, k^2, H, W]
    patches = patches.reshape(B, TAPS, HW).astype(matmul_dtype)

    # ---- fold inference-mode BN into conv weights, pack all branches into
    #      one lane-dense [K*C, TAPS] matrix (zero-padded to the 7x7 tap set) -
    w_rows, b_rows = [], []
    for i, k in enumerate(kernels):
        w = params["conv_w"][i]                                  # [Cout, Cin, k, k]
        b = params["conv_b"][i]
        scale = params["bn_gamma"][i] * jax.lax.rsqrt(params["bn_var"][i] + eps_bn)
        w_eff = w * scale[:, None, None, None]
        b_eff = (b - params["bn_mean"][i]) * scale + params["bn_beta"][i]
        off = pmax - k // 2
        w_emb = jnp.zeros((C, C, kmax, kmax), jnp.float32)
        w_emb = w_emb.at[:, :, off:off + k, off:off + k].set(w_eff)
        w_rows.append(w_emb.reshape(C, TAPS))
        b_rows.append(b_eff)
    w_all = jnp.concatenate(w_rows, axis=0).astype(matmul_dtype)  # [K*C, TAPS]
    b_all = jnp.concatenate(b_rows, axis=0).reshape(K * C, 1)     # f32

    # ---- squeeze/excite weights ---------------------------------------------
    wfc = params["fc_w"]                                           # [d, C]
    bfc = params["fc_b"].reshape(d, 1)
    wfcs = jnp.concatenate([params["fcs_w"][i] for i in range(K)], 0)   # [K*C, d]
    bfcs = jnp.concatenate([params["fcs_b"][i] for i in range(K)], 0).reshape(K * C, 1)

    kernel = functools.partial(_sk_attention_kernel, K=K, C=C, inv_hw=1.0 / HW)

    out = pl.pallas_call(
        kernel,
        out_shape=jax.ShapeDtypeStruct((B, C, HW), x.dtype),       # lane-dense HW
        grid=(B,),
        in_specs=[
            pl.BlockSpec((1, TAPS, HW), lambda b: (b, 0, 0)),      # im2col patches
            pl.BlockSpec((K * C, TAPS), lambda b: (0, 0)),         # packed conv W
            pl.BlockSpec((K * C, 1), lambda b: (0, 0)),            # packed bias
            pl.BlockSpec((d, C), lambda b: (0, 0)),                # fc weight
            pl.BlockSpec((d, 1), lambda b: (0, 0)),                # fc bias
            pl.BlockSpec((K * C, d), lambda b: (0, 0)),            # fcs weights
            pl.BlockSpec((K * C, 1), lambda b: (0, 0)),            # fcs biases
        ],
        out_specs=pl.BlockSpec((1, C, HW), lambda b: (b, 0, 0)),
        compiler_params=pltpu.CompilerParams(
            dimension_semantics=("parallel",),
            vmem_limit_bytes=32 * 1024 * 1024),
    )(patches, w_all, b_all, wfc, bfc, wfcs, bfcs)

    return out.reshape(B, C, H, W)


# ------------------------------------------------------------------
# Parameter init (matches nn.Conv2d / nn.Linear / nn.BatchNorm2d defaults)
# ------------------------------------------------------------------
def init_params(key, channel, kernels=(1, 3, 5, 7), reduction=16, L=32):
    d = max(L, channel // reduction)
    keys = iter(jax.random.split(key, 2 * len(kernels) + 2 + 2 * len(kernels)))
    conv_w, conv_b = [], []
    bn_gamma, bn_beta, bn_mean, bn_var = [], [], [], []
    for k in kernels:
        bound = float(channel * k * k) ** -0.5
        conv_w.append(jax.random.uniform(next(keys), (channel, channel, k, k),
                                         jnp.float32, -bound, bound))
        conv_b.append(jax.random.uniform(next(keys), (channel,),
                                         jnp.float32, -bound, bound))
        bn_gamma.append(jnp.ones((channel,), jnp.float32))
        bn_beta.append(jnp.zeros((channel,), jnp.float32))
        bn_mean.append(jnp.zeros((channel,), jnp.float32))
        bn_var.append(jnp.ones((channel,), jnp.float32))
    bound = float(channel) ** -0.5
    fc_w = jax.random.uniform(next(keys), (d, channel), jnp.float32, -bound, bound)
    fc_b = jax.random.uniform(next(keys), (d,), jnp.float32, -bound, bound)
    fcs_w, fcs_b = [], []
    bound = float(d) ** -0.5
    for _ in kernels:
        fcs_w.append(jax.random.uniform(next(keys), (channel, d),
                                        jnp.float32, -bound, bound))
        fcs_b.append(jax.random.uniform(next(keys), (channel,),
                                        jnp.float32, -bound, bound))
    return dict(conv_w=conv_w, conv_b=conv_b, bn_gamma=bn_gamma, bn_beta=bn_beta,
                bn_mean=bn_mean, bn_var=bn_var, fc_w=fc_w, fc_b=fc_b,
                fcs_w=fcs_w, fcs_b=fcs_b)


# ------------------------------------------------------------------
# Pure-JAX reference for correctness checking
# ------------------------------------------------------------------
def sk_attention_ref(x, params, kernels=(1, 3, 5, 7), eps_bn=1e-5):
    K = len(kernels)
    branches = []
    for i, k in enumerate(kernels):
        p = k // 2
        y = jax.lax.conv_general_dilated(
            x, params["conv_w"][i], window_strides=(1, 1),
            padding=[(p, p), (p, p)],
            dimension_numbers=("NCHW", "OIHW", "NCHW"))
        y = y + params["conv_b"][i][None, :, None, None]
        scale = params["bn_gamma"][i] / jnp.sqrt(params["bn_var"][i] + eps_bn)
        y = (y - params["bn_mean"][i][None, :, None, None]) * scale[None, :, None, None] \
            + params["bn_beta"][i][None, :, None, None]
        branches.append(jnp.maximum(y, 0.0))
    feats = jnp.stack(branches, 0)                     # [K, B, C, H, W]
    U = feats.sum(0)
    S = U.mean(axis=(2, 3))                            # [B, C]
    Z = S @ params["fc_w"].T + params["fc_b"]          # [B, d]
    logits = jnp.stack([Z @ params["fcs_w"][i].T + params["fcs_b"][i]
                        for i in range(K)], 0)         # [K, B, C]
    attn = jax.nn.softmax(logits, axis=0)[:, :, :, None, None]
    return (attn * feats).sum(0)


if __name__ == "__main__":
    key = jax.random.PRNGKey(0)
    kx, kp = jax.random.split(key)
    B, C, H, W = 2, 4, 16, 16
    kernels = (1, 3, 5, 7)

    x = jax.random.normal(kx, (B, C, H, W), jnp.float32)
    params = init_params(kp, C, kernels=kernels)

    ref = sk_attention_ref(x, params, kernels=kernels)

    # exact-path check: f32 matmul inputs
    out_f32 = sk_attention_forward(x, params, kernels=kernels,
                                   matmul_dtype=jnp.float32)
    jax.block_until_ready(out_f32)
    assert out_f32.shape == (B, C, H, W), out_f32.shape
    err = float(jnp.max(jnp.abs(out_f32 - ref)))
    assert err < 1e-4, err

    # fast path (default): bf16 matmul inputs, f32 accumulation & epilogue
    out_bf16 = sk_attention_forward(x, params, kernels=kernels)
    jax.block_until_ready(out_bf16)
    err_bf = float(jnp.max(jnp.abs(out_bf16 - ref)))
    assert err_bf < 5e-2, err_bf

    print("KERNEL_OK")
</pallas_src>

<mosaic_0001>
module attributes {stable_mosaic.version = 11 : i64} {
  func.func @_sk_attention_kernel(%arg0: i32, %arg1: memref<1x196x256xf32, #tpu.memory_space<vmem>>, %arg2: memref<16x196xf32, #tpu.memory_space<vmem>>, %arg3: memref<16x1xf32, #tpu.memory_space<vmem>>, %arg4: memref<32x4xf32, #tpu.memory_space<vmem>>, %arg5: memref<32x1xf32, #tpu.memory_space<vmem>>, %arg6: memref<16x32xf32, #tpu.memory_space<vmem>>, %arg7: memref<16x1xf32, #tpu.memory_space<vmem>>, %arg8: memref<1x4x256xf32, #tpu.memory_space<vmem>>) attributes {dimension_semantics = [#tpu.dimension_semantics<parallel>], iteration_bounds = array<i64: 2>, scalar_prefetch = 0 : i64, scratch_operands = 0 : i64, tpu.core_type = #tpu.core_type<tc>, window_params = [{transform_indices = @transform_0, window_bounds = array<i64: 1, 196, 256>}, {pipeline_mode = #tpu.pipeline_mode<synchronous>, transform_indices = @transform_1, window_bounds = array<i64: 16, 196>}, {pipeline_mode = #tpu.pipeline_mode<synchronous>, transform_indices = @transform_2, window_bounds = array<i64: 16, 1>}, {pipeline_mode = #tpu.pipeline_mode<synchronous>, transform_indices = @transform_3, window_bounds = array<i64: 32, 4>}, {pipeline_mode = #tpu.pipeline_mode<synchronous>, transform_indices = @transform_4, window_bounds = array<i64: 32, 1>}, {pipeline_mode = #tpu.pipeline_mode<synchronous>, transform_indices = @transform_5, window_bounds = array<i64: 16, 32>}, {pipeline_mode = #tpu.pipeline_mode<synchronous>, transform_indices = @transform_6, window_bounds = array<i64: 16, 1>}, {transform_indices = @transform_7, window_bounds = array<i64: 1, 4, 256>}]} {
    %c0 = arith.constant 0 : index
    %c0_0 = arith.constant 0 : index
    %0 = vector.load %arg2[%c0, %c0_0] : memref<16x196xf32, #tpu.memory_space<vmem>>, vector<16x196xf32>
    %c0_1 = arith.constant 0 : index
    %c0_2 = arith.constant 0 : index
    %c0_3 = arith.constant 0 : index
    %1 = vector.load %arg1[%c0_1, %c0_2, %c0_3] : memref<1x196x256xf32, #tpu.memory_space<vmem>>, vector<1x196x256xf32>
    %2 = vector.shape_cast %1 : vector<1x196x256xf32> to vector<196x256xf32>
    %cst = arith.constant dense<0.000000e+00> : vector<16x256xf32>
    %3 = tpu.matmul %0, %2, %cst {dimension_numbers = #tpu.dot_dimension_numbers<[1], [0], [0], [1], [0, 0, 1, 1], [], []>} : vector<16x196xf32>, vector<196x256xf32>, vector<16x256xf32> -> vector<16x256xf32>
    %c0_4 = arith.constant 0 : index
    %c0_5 = arith.constant 0 : index
    %4 = vector.load %arg3[%c0_4, %c0_5] : memref<16x1xf32, #tpu.memory_space<vmem>>, vector<16x1xf32>
    %5 = vector.broadcast %4 : vector<16x1xf32> to vector<16x256xf32>
    %6 = arith.addf %3, %5 : vector<16x256xf32>
    %cst_6 = arith.constant 0.000000e+00 : f32
    %7 = vector.broadcast %cst_6 : f32 to vector<16x256xf32>
    %8 = arith.maximumf %6, %7 : vector<16x256xf32>
    %9 = vector.extract_strided_slice %8 {offsets = [0, 0], sizes = [4, 256], strides = [1, 1]} : vector<16x256xf32> to vector<4x256xf32>
    %10 = vector.extract_strided_slice %8 {offsets = [4, 0], sizes = [4, 256], strides = [1, 1]} : vector<16x256xf32> to vector<4x256xf32>
    %11 = arith.addf %9, %10 : vector<4x256xf32>
    %12 = vector.extract_strided_slice %8 {offsets = [8, 0], sizes = [4, 256], strides = [1, 1]} : vector<16x256xf32> to vector<4x256xf32>
    %13 = arith.addf %11, %12 : vector<4x256xf32>
    %14 = vector.extract_strided_slice %8 {offsets = [12, 0], sizes = [4, 256], strides = [1, 1]} : vector<16x256xf32> to vector<4x256xf32>
    %15 = arith.addf %13, %14 : vector<4x256xf32>
    %cst_7 = arith.constant dense<0.000000e+00> : vector<4xf32>
    %16 = vector.multi_reduction <add>, %15, %cst_7 [1] : vector<4x256xf32> to vector<4xf32>
    %17 = vector.shape_cast %16 : vector<4xf32> to vector<4x1xf32>
    %cst_8 = arith.constant 3.906250e-03 : f32
    %18 = vector.broadcast %cst_8 : f32 to vector<4x1xf32>
    %19 = arith.mulf %17, %18 : vector<4x1xf32>
    %c0_9 = arith.constant 0 : index
    %c0_10 = arith.constant 0 : index
    %20 = vector.load %arg4[%c0_9, %c0_10] : memref<32x4xf32, #tpu.memory_space<vmem>>, vector<32x4xf32>
    %cst_11 = arith.constant dense<0.000000e+00> : vector<32x1xf32>
    %21 = tpu.matmul %20, %19, %cst_11 {dimension_numbers = #tpu.dot_dimension_numbers<[1], [0], [0], [1], [0, 0, 1, 1], [], []>} : vector<32x4xf32>, vector<4x1xf32>, vector<32x1xf32> -> vector<32x1xf32>
    %c0_12 = arith.constant 0 : index
    %c0_13 = arith.constant 0 : index
    %22 = vector.load %arg5[%c0_12, %c0_13] : memref<32x1xf32, #tpu.memory_space<vmem>>, vector<32x1xf32>
    %23 = arith.addf %21, %22 : vector<32x1xf32>
    %c0_14 = arith.constant 0 : index
    %c0_15 = arith.constant 0 : index
    %24 = vector.load %arg6[%c0_14, %c0_15] : memref<16x32xf32, #tpu.memory_space<vmem>>, vector<16x32xf32>
    %cst_16 = arith.constant dense<0.000000e+00> : vector<16x1xf32>
    %25 = tpu.matmul %24, %23, %cst_16 {dimension_numbers = #tpu.dot_dimension_numbers<[1], [0], [0], [1], [0, 0, 1, 1], [], []>} : vector<16x32xf32>, vector<32x1xf32>, vector<16x1xf32> -> vector<16x1xf32>
    %c0_17 = arith.constant 0 : index
    %c0_18 = arith.constant 0 : index
    %26 = vector.load %arg7[%c0_17, %c0_18] : memref<16x1xf32, #tpu.memory_space<vmem>>, vector<16x1xf32>
    %27 = arith.addf %25, %26 : vector<16x1xf32>
    %28 = vector.extract_strided_slice %27 {offsets = [0, 0], sizes = [4, 1], strides = [1, 1]} : vector<16x1xf32> to vector<4x1xf32>
    %29 = vector.extract_strided_slice %27 {offsets = [4, 0], sizes = [4, 1], strides = [1, 1]} : vector<16x1xf32> to vector<4x1xf32>
    %30 = arith.maximumf %28, %29 : vector<4x1xf32>
    %31 = vector.extract_strided_slice %27 {offsets = [8, 0], sizes = [4, 1], strides = [1, 1]} : vector<16x1xf32> to vector<4x1xf32>
    %32 = arith.maximumf %30, %31 : vector<4x1xf32>
    %33 = vector.extract_strided_slice %27 {offsets = [12, 0], sizes = [4, 1], strides = [1, 1]} : vector<16x1xf32> to vector<4x1xf32>
    %34 = arith.maximumf %32, %33 : vector<4x1xf32>
    %35 = vector.extract_strided_slice %27 {offsets = [0, 0], sizes = [4, 1], strides = [1, 1]} : vector<16x1xf32> to vector<4x1xf32>
    %36 = arith.subf %35, %34 : vector<4x1xf32>
    %37 = math.exp %36 : vector<4x1xf32>
    %38 = vector.extract_strided_slice %27 {offsets = [4, 0], sizes = [4, 1], strides = [1, 1]} : vector<16x1xf32> to vector<4x1xf32>
    %39 = arith.subf %38, %34 : vector<4x1xf32>
    %40 = math.exp %39 : vector<4x1xf32>
    %41 = vector.extract_strided_slice %27 {offsets = [8, 0], sizes = [4, 1], strides = [1, 1]} : vector<16x1xf32> to vector<4x1xf32>
    %42 = arith.subf %41, %34 : vector<4x1xf32>
    %43 = math.exp %42 : vector<4x1xf32>
    %44 = vector.extract_strided_slice %27 {offsets = [12, 0], sizes = [4, 1], strides = [1, 1]} : vector<16x1xf32> to vector<4x1xf32>
    %45 = arith.subf %44, %34 : vector<4x1xf32>
    %46 = math.exp %45 : vector<4x1xf32>
    %47 = arith.addf %37, %40 : vector<4x1xf32>
    %48 = arith.addf %47, %43 : vector<4x1xf32>
    %49 = arith.addf %48, %46 : vector<4x1xf32>
    %cst_19 = arith.constant 1.000000e+00 : f32
    %50 = vector.broadcast %cst_19 : f32 to vector<4x1xf32>
    %51 = arith.divf %50, %49 : vector<4x1xf32>
    %52 = vector.extract_strided_slice %8 {offsets = [0, 0], sizes = [4, 256], strides = [1, 1]} : vector<16x256xf32> to vector<4x256xf32>
    %53 = arith.mulf %37, %51 : vector<4x1xf32>
    %54 = vector.broadcast %53 : vector<4x1xf32> to vector<4x256xf32>
    %55 = arith.mulf %52, %54 : vector<4x256xf32>
    %56 = vector.extract_strided_slice %8 {offsets = [4, 0], sizes = [4, 256], strides = [1, 1]} : vector<16x256xf32> to vector<4x256xf32>
    %57 = arith.mulf %40, %51 : vector<4x1xf32>
    %58 = vector.broadcast %57 : vector<4x1xf32> to vector<4x256xf32>
    %59 = arith.mulf %56, %58 : vector<4x256xf32>
    %60 = arith.addf %55, %59 : vector<4x256xf32>
    %61 = vector.extract_strided_slice %8 {offsets = [8, 0], sizes = [4, 256], strides = [1, 1]} : vector<16x256xf32> to vector<4x256xf32>
    %62 = arith.mulf %43, %51 : vector<4x1xf32>
    %63 = vector.broadcast %62 : vector<4x1xf32> to vector<4x256xf32>
    %64 = arith.mulf %61, %63 : vector<4x256xf32>
    %65 = arith.addf %60, %64 : vector<4x256xf32>
    %66 = vector.extract_strided_slice %8 {offsets = [12, 0], sizes = [4, 256], strides = [1, 1]} : vector<16x256xf32> to vector<4x256xf32>
    %67 = arith.mulf %46, %51 : vector<4x1xf32>
    %68 = vector.broadcast %67 : vector<4x1xf32> to vector<4x256xf32>
    %69 = arith.mulf %66, %68 : vector<4x256xf32>
    %70 = arith.addf %65, %69 : vector<4x256xf32>
    %c0_20 = arith.constant 0 : index
    %c0_21 = arith.constant 0 : index
    %c0_22 = arith.constant 0 : index
    %71 = vector.load %arg8[%c0_20, %c0_21, %c0_22] : memref<1x4x256xf32, #tpu.memory_space<vmem>>, vector<1x4x256xf32>
    %72 = vector.shape_cast %71 : vector<1x4x256xf32> to vector<4x256xf32>
    %73 = vector.shape_cast %70 : vector<4x256xf32> to vector<1x4x256xf32>
    tpu.vector_store %arg8[%c0_20, %c0_21, %c0_22], %73 {strides = array<i32>} : memref<1x4x256xf32, #tpu.memory_space<vmem>>, vector<1x4x256xf32>,
    return
  }
  func.func @transform_0(%arg0: i32) -> (i32, i32, i32) {
    %c0_i32 = arith.constant 0 : i32
    %c0_i32_0 = arith.constant 0 : i32
    %c0_i32_1 = arith.constant 0 : i32
    return %arg0, %c0_i32, %c0_i32_0 : i32, i32, i32
  }
  func.func @transform_1(%arg0: i32) -> (i32, i32) {
    %c0_i32 = arith.constant 0 : i32
    %c0_i32_0 = arith.constant 0 : i32
    %c0_i32_1 = arith.constant 0 : i32
    return %c0_i32, %c0_i32_0 : i32, i32
  }
  func.func @transform_2(%arg0: i32) -> (i32, i32) {
    %c0_i32 = arith.constant 0 : i32
    %c0_i32_0 = arith.constant 0 : i32
    %c0_i32_1 = arith.constant 0 : i32
    return %c0_i32, %c0_i32_0 : i32, i32
  }
  func.func @transform_3(%arg0: i32) -> (i32, i32) {
    %c0_i32 = arith.constant 0 : i32
    %c0_i32_0 = arith.constant 0 : i32
    %c0_i32_1 = arith.constant 0 : i32
    return %c0_i32, %c0_i32_0 : i32, i32
  }
  func.func @transform_4(%arg0: i32) -> (i32, i32) {
    %c0_i32 = arith.constant 0 : i32
    %c0_i32_0 = arith.constant 0 : i32
    %c0_i32_1 = arith.constant 0 : i32
    return %c0_i32, %c0_i32_0 : i32, i32
  }
  func.func @transform_5(%arg0: i32) -> (i32, i32) {
    %c0_i32 = arith.constant 0 : i32
    %c0_i32_0 = arith.constant 0 : i32
    %c0_i32_1 = arith.constant 0 : i32
    return %c0_i32, %c0_i32_0 : i32, i32
  }
  func.func @transform_6(%arg0: i32) -> (i32, i32) {
    %c0_i32 = arith.constant 0 : i32
    %c0_i32_0 = arith.constant 0 : i32
    %c0_i32_1 = arith.constant 0 : i32
    return %c0_i32, %c0_i32_0 : i32, i32
  }
  func.func @transform_7(%arg0: i32) -> (i32, i32, i32) {
    %c0_i32 = arith.constant 0 : i32
    %c0_i32_0 = arith.constant 0 : i32
    %c0_i32_1 = arith.constant 0 : i32
    return %arg0, %c0_i32, %c0_i32_0 : i32, i32, i32
  }
}

</mosaic_0001>

<bundles_post_ra>
// kernel: tpu_custom_call.1
= control target key start
LH: loop header
LB: loop body
LE: loop exit
PB: predicated region body
PF: predicated region fallthrough
CT: control target
= control target key end

     0   :  { %12 = vsyncpa [#allocation3], 0  ;;  %s1261_s0 = inlined_call_operand.vmem [shape: f32[2,196,256], index: 0, kind: input, shape index: {}]   ;;  %s1262_s1 = inlined_call_operand.vmem [shape: f32[16,196], index: 1, kind: input, shape index: {}]   ;;  %s1263_s2 = inlined_call_operand.vmem [shape: f32[16,1], index: 2, kind: input, shape index: {}]   ;;  %s1264_s3 = inlined_call_operand.vmem [shape: f32[32,4], index: 3, kind: input, shape index: {}]   ;;  %s1265_s4 = inlined_call_operand.vmem [shape: f32[32,1], index: 4, kind: input, shape index: {}]   ;;  %s1266_s5 = inlined_call_operand.vmem [shape: f32[16,32], index: 5, kind: input, shape index: {}]   ;;  %s1267_s6 = inlined_call_operand.vmem [shape: f32[16,1], index: 6, kind: input, shape index: {}]   ;;  %s1268_s7 = inlined_call_operand.hbm [shape: f32[2,4,256], index: 7, kind: output, shape index: {}]  }
   0x1   :  { %14 = vsyncpa [#allocation3 + $0x1], 0  ;;  %s1034_s24 = smov 0   ;;  %s1036_s25 = smov 0  }
   0x2   :  { %s1038_s26 = smov 0   ;;  %s1040_s27 = smov 0  }
   0x3 LB: > { %s1055_s28 = sadd.s32 4294967295, %s990_s27   ;;  %s824_s29 = sadd.s32 4294967294, %s990_s27   ;;  %s990_s27 = sphi %s1040_s27, %s1274_s27   ;;  %s986_s26 = sphi %s1038_s26, %s1273_s26   ;;  %s982_s25 = sphi %s1036_s25, %s1272_s25   ;;  %s978_s24 = sphi %s1034_s24, %s1271_s24  }
   0x4   : > { %s1059_s30 = sadd.s32 1, %s990_s27   ;;  %s179_s8 = sadd.s32 1, %s986_s26 }
   0x5   : > { %s176_s9 = ssub.s32 %s990_s27, %s1059_s30  ;;  %p189_p0 = scmp.ne.s32.totalorder %s986_s26, %s982_s25 }
   0x6   : > { %p177_p1 = scmp.eq.s32.totalorder %s176_s9, 0  ;;  %p190_p2 = scmp.eq.s32.totalorder %s1055_s28, 1 }
   0x7   : > { %p195_p3 = scmp.ne.s32.totalorder %s982_s25, %s978_s24  ;;  %p196_p4 = scmp.eq.s32.totalorder %s824_s29, 1 }
   0x8   : > { %s1070_s10 = scalar_select %p177_p1, %s986_s26, %s179_s8  }
   0x9   : > { %p1072_p5 = por %p190_p2, %p189_p0  ;;  %p1076_p6 = por %p196_p4, %p195_p3 }
   0xa   : > { %p827_p7 = scmp.ge.s32.totalorder %s990_s27, 1  ;;  %p240_p8 = scmp.lt.s32.totalorder %s990_s27, 3 }
   0xc   : > { %p241_p9 = pnand %p827_p7, %p240_p8 }
   0xd   : > { %p272_p10 = scmp.lt.s32.totalorder (!%p241_p9), %s1055_s28, 1  ;;  %s269_s9 = sand.u32 (!%p241_p9), 1, %s982_s25  }
   0xe   : > { %244 = sbr.rel (%p241_p9) target bundleno = 1036 (0x40c), region = 48  ;;  %s828_s13 = sshll.u32 (!%p241_p9), %s269_s9, 3 }
   0xf   : > { %s846_s14 = sshll.u32 (!%p241_p9), %s1055_s28, 7  ;;  %s271_s15 = scalar_lea.vmem (!%p241_p9), [#allocation2], %s828_s13 }
  0x10   : > { %s765_s16 = sshll.u32 (!%p241_p9), %s271_s15, 4  ;;  %s763_s19 = scalar_lea.hbm (!%p241_p9), %s1268_s7, %s846_s14  ;;  %s766_s16 = int_to_ptr.vmem [resolvable:$true] %s765_s16 }
  0x11   : > { %s751_s20 = scalar_lea.sflag (!%p241_p9), [#allocation3], %s269_s9  ;;  %s930_s21 = scalar_lea.vmem (!%p241_p9), %s766_s16, 128 }
  0x12   : > { %p931_p11 = scmp.ne.s32.totalorder (!%p241_p9), %s766_s16, %s930_s21  ;;  %s993_s22 = smov (!%p241_p9), [#allocation2]  }
  0x13   : > { %v278_v0 = vld [vmem:[%s1262_s1 + $0x8] sm:$0xff]  ;;  %vm343_vm0 = vcmask 556032   ;;  %v331_v1 = vld [vmem:[%s1263_s2] sm:$0xff]  ;;  %s273_s17 = scalar_select %p272_p10, %s1055_s28, 1  ;;  %v992_v2 = vmov 0   ;;  %vm350_vm1 = vcmask 1043456  }
  0x14   : > { %832 = vmatprep.mubr.msk.f32.mxu0 %vm343_vm0, %v278_v0  ;;  %918 = vset.pattern.permute.xlu0 %v992_v2  ;;  %v332_v3 = vld [vmem:[%s1263_s2 + $0x8] sm:$0xff]  ;;  %v277_v54 = vld [vmem:[%s1262_s1] sm:$0xff]  ;;  %v280_v55 = vld [vmem:[%s1262_s1 + $0x18] sm:$0xff]  ;;  %vm470_vm2 = vcmask 31744   ;;  %vm575_vm3 = vcmask 261120   ;;  %p932_p12 = pnand %p931_p11, %p1072_p5 }
  0x15   : > { %919 = vset.pattern.permute.xlu1 %v992_v2  ;;  %335 = vperm.xlu0 %918, %v331_v1   ;;  %s877_s18 = smul.u32 400, %s273_s17  ;;  %v279_v56 = vld [vmem:[%s1262_s1 + $0x10] sm:$0xff] }
  0x16   : > { %p933_p13 = pneg %p932_p12 }
  0x17   : > { %s1097_s23 = scalar_lea.vmem %s1261_s0, %s877_s18 }
  0x18   : > { %v312_v4 = vld [vmem:[%s1097_s23 + $0xf8] sm:$0xff]  ;;  %v311_v5 = vld [vmem:[%s1097_s23 + $0xf0] sm:$0xff]  ;;  %v310_v6 = vld [vmem:[%s1097_s23 + $0xe8] sm:$0xff] }
  0x19   : > { %340 = vperm.xlu0 %918, %v332_v3   ;;  %357 = vmatprep.subr.mxu0 %v312_v4  ;;  %v309_v7 = vld [vmem:[%s1097_s23 + $0xe0] sm:$0xff]  ;;  %v308_v8 = vld [vmem:[%s1097_s23 + $0xd8] sm:$0xff]  ;;  %v307_v9 = vld [vmem:[%s1097_s23 + $0xd0] sm:$0xff] }
  0x1a   : > { %358 = vmatpush1.msra.mxu0 %v311_v5  ;;  %v306_v10 = vld [vmem:[%s1097_s23 + $0xc8] sm:$0xff]  ;;  %v305_v11 = vld [vmem:[%s1097_s23 + $0xc0] sm:$0xff]  ;;  %v304_v12 = vld [vmem:[%s1097_s23 + $0xb8] sm:$0xff] }
  0x1b   : > { %359 = vmatprep.subr.mxu0 %v310_v6  ;;  %v303_v13 = vld [vmem:[%s1097_s23 + $0xb0] sm:$0xff]  ;;  %v302_v14 = vld [vmem:[%s1097_s23 + $0xa8] sm:$0xff]  ;;  %v301_v15 = vld [vmem:[%s1097_s23 + $0xa0] sm:$0xff] }
  0x1c   : > { %360 = vmatpush1.msra.mxu0 %v309_v7  ;;  %v300_v16 = vld [vmem:[%s1097_s23 + $0x98] sm:$0xff]  ;;  %v299_v17 = vld [vmem:[%s1097_s23 + $0x90] sm:$0xff]  ;;  %v298_v18 = vld [vmem:[%s1097_s23 + $0x88] sm:$0xff] }
  0x1d   : > { %361 = vmatprep.subr.mxu0 %v308_v8  ;;  %v297_v19 = vld [vmem:[%s1097_s23 + $0x80] sm:$0xff]  ;;  %v296_v20 = vld [vmem:[%s1097_s23 + $0x78] sm:$0xff]  ;;  %v295_v21 = vld [vmem:[%s1097_s23 + $0x70] sm:$0xff] }
  0x1e   : > { %362 = vmatpush1.msra.mxu0 %v307_v9  ;;  %v294_v22 = vld [vmem:[%s1097_s23 + $0x68] sm:$0xff]  ;;  %v293_v23 = vld [vmem:[%s1097_s23 + $0x60] sm:$0xff]  ;;  %v292_v24 = vld [vmem:[%s1097_s23 + $0x58] sm:$0xff] }
  0x1f   : > { %363 = vmatprep.subr.mxu0 %v306_v10  ;;  %v291_v25 = vld [vmem:[%s1097_s23 + $0x50] sm:$0xff]  ;;  %v290_v26 = vld [vmem:[%s1097_s23 + $0x48] sm:$0xff]  ;;  %v289_v27 = vld [vmem:[%s1097_s23 + $0x40] sm:$0xff] }
  0x20   : > { %364 = vmatpush1.msra.mxu0 %v305_v11  ;;  %v288_v28 = vld [vmem:[%s1097_s23 + $0x38] sm:$0xff]  ;;  %v287_v29 = vld [vmem:[%s1097_s23 + $0x30] sm:$0xff]  ;;  %v286_v30 = vld [vmem:[%s1097_s23 + $0x28] sm:$0xff] }
  0x21   : > { %365 = vmatprep.subr.mxu0 %v304_v12  ;;  %v285_v31 = vld [vmem:[%s1097_s23 + $0x20] sm:$0xff]  ;;  %v284_v32 = vld [vmem:[%s1097_s23 + $0x18] sm:$0xff]  ;;  %v283_v33 = vld [vmem:[%s1097_s23 + $0x10] sm:$0xff] }
  0x22   : > { %366 = vmatpush1.msra.mxu0 %v303_v13  ;;  %v282_v34 = vld [vmem:[%s1097_s23 + $0x8] sm:$0xff]  ;;  %v281_v35 = vld [vmem:[%s1097_s23] sm:$0xff]  ;;  %v328_v38 = vld [vmem:[%s1097_s23 + $0x178] sm:$0xff] }
  0x23   : > { %367 = vmatprep.subr.mxu0 %v302_v14  ;;  %v330_v36 = vld [vmem:[%s1097_s23 + $0x188] sm:$0xf]  ;;  %v329_v37 = vld [vmem:[%s1097_s23 + $0x180] sm:$0xf]  ;;  %v327_v39 = vld [vmem:[%s1097_s23 + $0x170] sm:$0xff] }
  0x24   : > { %368 = vmatpush1.msra.mxu0 %v301_v15  ;;  %v326_v40 = vld [vmem:[%s1097_s23 + $0x168] sm:$0xff]  ;;  %v325_v41 = vld [vmem:[%s1097_s23 + $0x160] sm:$0xff]  ;;  %v324_v42 = vld [vmem:[%s1097_s23 + $0x158] sm:$0xff] }
  0x25   : > { %369 = vmatprep.subr.mxu0 %v300_v16  ;;  %v323_v43 = vld [vmem:[%s1097_s23 + $0x150] sm:$0xff]  ;;  %v322_v44 = vld [vmem:[%s1097_s23 + $0x148] sm:$0xff]  ;;  %v321_v45 = vld [vmem:[%s1097_s23 + $0x140] sm:$0xff] }
  0x26   : > { %370 = vmatpush1.msra.mxu0 %v299_v17  ;;  %v320_v46 = vld [vmem:[%s1097_s23 + $0x138] sm:$0xff]  ;;  %v319_v47 = vld [vmem:[%s1097_s23 + $0x130] sm:$0xff]  ;;  %v318_v48 = vld [vmem:[%s1097_s23 + $0x128] sm:$0xff] }
  0x27   : > { %371 = vmatprep.subr.mxu0 %v298_v18  ;;  %v317_v49 = vld [vmem:[%s1097_s23 + $0x120] sm:$0xff]  ;;  %v316_v50 = vld [vmem:[%s1097_s23 + $0x118] sm:$0xff]  ;;  %v315_v51 = vld [vmem:[%s1097_s23 + $0x110] sm:$0xff] }
  0x28   : > { %372 = vmatpush1.msra.mxu0 %v297_v19  ;;  %v314_v52 = vld [vmem:[%s1097_s23 + $0x108] sm:$0xff]  ;;  %v313_v53 = vld [vmem:[%s1097_s23 + $0x100] sm:$0xff]  ;;  %s934_s23 = sshll.u32 %s993_s22, 4  ;;  %s935_s23 = int_to_ptr.vmem [resolvable:$false] %s934_s23 }
  0x29   : > { %373 = vmatprep.subr.mxu0 %v296_v20  ;;  %v462_v20 = vld [vmem:[%s1264_s3] sm:$0xff]  ;;  %s936_s28 = scalar_lea.vmem %s935_s23, 256  ;;  %p937_p0 = scmp.lt.s32.totalorder %s766_s16, %s935_s23 }
  0x2a   : > { %374 = vmatpush1.msra.mxu0 %v295_v21  ;;  %860 = vmatprep.mubr.msk.f32.mxu1 %vm470_vm2, %v462_v20  ;;  %p938_p1 = scmp.lt.s32.totalorder %s936_s28, %s930_s21 }
  0x2b   : > { %375 = vmatprep.subr.mxu0 %v294_v22 }
  0x2c   : > { %376 = vmatpush1.msra.mxu0 %v293_v23  ;;  %v463_v23 = vld [vmem:[%s1264_s3 + $0x8] sm:$0xff]  ;;  %p939_p2 = por %p938_p1, %p937_p0 }
  0x2d   : > { %377 = vmatprep.subr.mxu0 %v292_v24  ;;  %v464_v24 = vld [vmem:[%s1264_s3 + $0x10] sm:$0xff] }
  0x2e   : > { %378 = vmatpush1.msra.mxu0 %v291_v25  ;;  %v465_v25 = vld [vmem:[%s1264_s3 + $0x18] sm:$0xff]  ;;  %p940_p3 = pnand %p939_p2, %p933_p13 }
  0x2f   : > { %379 = vmatprep.subr.mxu0 %v290_v26  ;;  %v571_v26 = vld [vmem:[%s1266_s5] sm:$0xff] }
  0x30   : > { %380 = vmatpush1.msra.mxu0 %v289_v27 }
  0x31   : > { %381 = vmatprep.subr.mxu0 %v288_v28 }
  0x32   : > { %382 = vmatpush1.msra.mxu0 %v287_v29  ;;  %v469_v29 = vld [vmem:[%s1265_s4 + $0x18] sm:$0xff] }
  0x33   : > { %383 = vmatprep.subr.mxu0 %v286_v30 }
  0x34   : > { %384 = vmatpush1.msra.mxu0 %v285_v31  ;;  %v468_v31 = vld [vmem:[%s1265_s4 + $0x10] sm:$0xff] }
  0x35   : > { %385 = vmatprep.subr.mxu0 %v284_v32 }
  0x36   : > { %386 = vmatpush1.msra.mxu0 %v283_v33  ;;  %v467_v33 = vld [vmem:[%s1265_s4 + $0x8] sm:$0xff] }
  0x37   : > { %387 = vmatprep.subr.mxu0 %v282_v34 }
  0x38   : > { %388 = vmatpush1.msra.mxu0 %v281_v35 }
  0x39   : > { %830 = vmatprep.subr.msk.mxu0 %vm350_vm1, %v330_v36  ;;  %v466_v36 = vld [vmem:[%s1265_s4] sm:$0xff] }
  0x3a   : > { %831 = vmatpush2.msk.msra.mxu0 %vm350_vm1, %v329_v37 }
  0x3b   : > { %405 = vmatprep.subr.mxu0 %v328_v38 }
  0x3c   : > { %406 = vmatpush2.msra.mxu0 %v327_v39  ;;  %v572_v39 = vld [vmem:[%s1266_s5 + $0x8] sm:$0xff] }
  0x3d   : > { %407 = vmatprep.subr.mxu0 %v326_v40 }
  0x3e   : > { %408 = vmatpush2.msra.mxu0 %v325_v41  ;;  %v573_v41 = vld [vmem:[%s1267_s6] sm:$0xff] }
  0x3f   : > { %409 = vmatprep.subr.mxu0 %v324_v42  ;;  %v574_v42 = vld [vmem:[%s1267_s6 + $0x8] sm:$0xff] }
  0x40   : > { %410 = vmatpush2.msra.mxu0 %v323_v43 }
  0x41   : > { %411 = vmatprep.subr.mxu0 %v322_v44 }
  0x42   : > { %412 = vmatpush2.msra.mxu0 %v321_v45 }
  0x43   : > { %413 = vmatprep.subr.mxu0 %v320_v46 }
  0x44   : > { %414 = vmatpush2.msra.mxu0 %v319_v47 }
  0x45   : > { %415 = vmatprep.subr.mxu0 %v318_v48 }
  0x46   : > { %416 = vmatpush2.msra.mxu0 %v317_v49 }
  0x47   : > { %417 = vmatprep.subr.mxu0 %v316_v50 }
  0x48   : > { %418 = vmatpush2.msra.mxu0 %v315_v51 }
  0x49   : > { %419 = vmatprep.subr.mxu0 %v314_v52 }
  0x4a   : > { %420 = vmatpush2.msra.mxu0 %v313_v53 }
  0x4b   : > { %422 = vmatmul.mubr.f32.vlgmr.msra.gmra.mxu0 %v277_v54 }
  0x4c   : > { %833 = vmatprep.mubr.msk.f32.mxu0 %vm343_vm0, %v280_v55 }
  0x4f   : > { %428 = vmatmul.mubr.f32.gmra.mxu0 %v279_v56 }
  0x90   : > { %v336_v57 = vpop.permute.xlu0 %335 }
  0x94   : > { %v341_v63 = vpop.permute.xlu0 %340 }
 0x10b   : > { %v423_v58 = vpop.f32.mrf.mxu0 }
 0x10c   : > { %v424_v59 = vadd.f32 %v423_v58, %v336_v57 }
 0x10d   : > { %v425_v60 = vpop.f32.mrf.mxu0 }
 0x10e   : > { %v1161_v61 = vmax.f32 %v424_v59, 0.0  ;;  %v426_v62 = vadd.f32 %v425_v60, %v336_v57 }
 0x10f   : > { %v429_v0 = vpop.f32.mrf.mxu0 }
 0x110   : > { %v1163_v1 = vmax.f32 %v426_v62, 0.0  ;;  %v430_v2 = vadd.f32 %v429_v0, %v341_v63  ;;  %v440_v3 = vrot.slane %v1161_v61, 4 }
 0x111   : > { %v431_v4 = vpop.f32.mrf.mxu0 }
 0x112   : > { %v1166_v5 = vmax.f32 %v430_v2, 0.0  ;;  %v432_v6 = vadd.f32 %v431_v4, %v341_v63  ;;  %v441_v7 = vrot.slane %v1163_v1, 4  ;;  %v444_v8 = vadd.f32 %v440_v3, %v1161_v61 }
 0x114   : > { %v1170_v9 = vmax.f32 %v432_v6, 0.0  ;;  %v445_v10 = vadd.f32 %v441_v7, %v1163_v1  ;;  %v446_v11 = vadd.f32 %v444_v8, %v1166_v5  ;;  %v450_v12 = vrot.slane %v1166_v5, 4 }
 0x116   : > { %v447_v13 = vadd.f32 %v445_v10, %v1170_v9  ;;  %v451_v14 = vrot.slane %v1170_v9, 4  ;;  %v454_v15 = vadd.f32 %v450_v12, %v446_v11 }
 0x118   : > { %v455_v16 = vadd.f32 %v451_v14, %v447_v13  ;;  %v456_v17 = vsel %vm350_vm1, %v454_v15, 0.0 }
 0x11a   : > { %v457_v18 = vsel %vm350_vm1, %v455_v16, 0.0 }
 0x11b   : > { %v458_v19 = vadd.f32 %v457_v18, %v456_v17 }
 0x11d   : > { %459 = vadd.xlane.f32.xlu1 %v458_v19 }
 0x1a6   : > { %v460_v21 = vpop.xlane.xlu1 %459 }
 0x1a7   : > { %v461_v22 = vmul.f32 0.00390625, %v460_v21 }
 0x1a9   : > { %858 = vmatprep.subr.msk.mxu1 %vm350_vm1, %v461_v22 }
 0x1aa   : > { %859 = vmatpush3.msk.msra.mxu1 %vm350_vm1, %v461_v22 }
 0x1ab   : > { %861 = vmatmul.mubr.msk.f32.vlgmr.msra.gmra.mxu1 %vm470_vm2, %v463_v23 }
 0x1ac   : > { %863 = vmatprep.mubr.msk.f32.mxu1 %vm470_vm2, %v464_v24 }
 0x1af   : > { %864 = vmatmul.mubr.msk.f32.gmra.mxu1 %vm470_vm2, %v465_v25 }
 0x1b0   : > { %874 = vmatprep.mubr.msk.f32.mxu1 %vm575_vm3, %v571_v26 }
 0x26b   : > { %v862_v27 = vpop.f32.mrf.mxu1 }
 0x26c   : > { %v558_v37 = vadd.f32 %v862_v27, %v467_v33 }
 0x26d   : > { %v552_v28 = vpop.f32.mrf.mxu1 }
 0x26e   : > { %v553_v38 = vadd.f32 %v552_v28, %v466_v36 }
 0x26f   : > { %v865_v30 = vpop.f32.mrf.mxu1 }
 0x270   : > { %v568_v32 = vadd.f32 %v865_v30, %v469_v29 }
 0x271   : > { %v562_v34 = vpop.f32.mrf.mxu1 }
 0x272   : > { %v563_v35 = vadd.f32 %v562_v34, %v468_v31  ;;  %866 = vmatprep.subr.mxu1 %v568_v32 }
 0x273   : > { %867 = vmatpush3.msra.mxu1 %v568_v32 }
 0x274   : > { %868 = vmatprep.subr.mxu1 %v563_v35 }
 0x275   : > { %869 = vmatpush3.msra.mxu1 %v563_v35 }
 0x276   : > { %870 = vmatprep.subr.mxu1 %v558_v37 }
 0x277   : > { %871 = vmatpush3.msra.mxu1 %v558_v37 }
 0x278   : > { %872 = vmatprep.subr.mxu1 %v553_v38 }
 0x279   : > { %873 = vmatpush3.msra.mxu1 %v553_v38 }
 0x27a   : > { %875 = vmatmul.mubr.msk.f32.vlgmr.msra.gmra.mxu1 %vm575_vm3, %v572_v39 }
 0x33a   : > { %v876_v40 = vpop.f32.mrf.mxu1 }
 0x33b   : > { %v654_v45 = vadd.f32 %v876_v40, %v574_v42 }
 0x33c   : > { %v648_v43 = vpop.f32.mrf.mxu1 }
 0x33d   : > { %v649_v44 = vadd.f32 %v648_v43, %v573_v41  ;;  %v663_v48 = vrot.slane %v654_v45, 4 }
 0x33f   : > { %v658_v46 = vrot.slane %v649_v44, 4 }
 0x341   : > { %v660_v47 = vmax.f32 %v649_v44, %v658_v46 }
 0x343   : > { %v661_v49 = vmax.f32 %v660_v47, %v654_v45 }
 0x345   : > { %v665_v50 = vmax.f32 %v661_v49, %v663_v48 }
 0x347   : > { %v666_v51 = vsub.f32 %v649_v44, %v665_v50  ;;  %v670_v52 = vrot.slane %v665_v50, 4  ;;  %v675_v54 = vsub.f32 %v654_v45, %v665_v50 }
 0x349   : > { %v672_v53 = vsub.f32 %v649_v44, %v670_v52  ;;  %v678_v55 = vsub.f32 %v654_v45, %v670_v52  ;;  %v667_v56 = vmul.f32 1.442695, %v666_v51  ;;  %v676_v59 = vmul.f32 1.442695, %v675_v54 }
 0x34b   : > { %v673_v57 = vmul.f32 1.442695, %v672_v53  ;;  %v679_v58 = vmul.f32 1.442695, %v678_v55 }
 0x34d   : > { %920 = vpow2.f32 %v673_v57 }
 0x34e   : > { %922 = vpow2.f32 %v667_v56 }
 0x34f   : > { %924 = vpow2.f32 %v679_v58 }
 0x350   : > { %926 = vpow2.f32 %v676_v59 }
 0x35a   : > { %v921_v60 = vpop.eup %920 }
 0x35b   : > { %v923_v62 = vpop.eup %922  ;;  %v682_v63 = vrot.slane %v921_v60, 4 }
 0x35c   : > { %v925_v0 = vpop.eup %924 }
 0x35d   : > { %v684_v2 = vadd.f32 %v923_v62, %v682_v63  ;;  %v927_v3 = vpop.eup %926  ;;  %v687_v6 = vrot.slane %v925_v0, 4 }
 0x35f   : > { %v685_v4 = vadd.f32 %v927_v3, %v684_v2 }
 0x361   : > { %v689_v7 = vadd.f32 %v687_v6, %v685_v4 }
 0x363   : > { %928 = vrcp.f32 %v689_v7 }
 0x370   : > { %v929_v8 = vpop.eup %928 }
 0x371   : > { %v692_v10 = vmul.f32 %v929_v8, %v923_v62  ;;  %v701_v11 = vrot.slane %v929_v8, 4  ;;  %v719_v13 = vmul.f32 %v929_v8, %v927_v3 }
 0x373   : > { %695 = vperm.xlu0 %918, %v692_v10   ;;  %v703_v12 = vmul.f32 %v921_v60, %v701_v11  ;;  %v729_v14 = vmul.f32 %v925_v0, %v701_v11 }
 0x375   : > { %706 = vperm.xlu1 %919, %v703_v12  }
 0x377   : > { %722 = vperm.xlu0 %918, %v719_v13  }
 0x37b   : > { %732 = vperm.xlu0 %918, %v729_v14  }
 0x3ee   : > { %v696_v15 = vpop.permute.xlu0 %695 }
 0x3ef   : > { %v698_v20 = vmul.f32 %v696_v15, %v1161_v61  ;;  %v699_v21 = vmul.f32 %v696_v15, %v1163_v1 }
 0x3f0   : > { %v707_v16 = vpop.permute.xlu1 %706 }
 0x3f1   : > { %v709_v17 = vmul.f32 %v707_v16, %v1161_v61  ;;  %v710_v18 = vmul.f32 %v707_v16, %v1163_v1 }
 0x3f2   : > { %v723_v19 = vpop.permute.xlu0 %722 }
 0x3f3   : > { %v713_v22 = vrot.slane %v709_v17, 4  ;;  %v714_v23 = vrot.slane %v710_v18, 4  ;;  %v725_v27 = vmul.f32 %v723_v19, %v1166_v5  ;;  %v726_v28 = vmul.f32 %v723_v19, %v1170_v9 }
 0x3f5   : > { %v717_v24 = vadd.f32 %v713_v22, %v698_v20  ;;  %v718_v25 = vadd.f32 %v714_v23, %v699_v21 }
 0x3f6   : > { %v733_v26 = vpop.permute.xlu0 %732 }
 0x3f7   : > { %v735_v29 = vmul.f32 %v733_v26, %v1166_v5  ;;  %v736_v30 = vmul.f32 %v733_v26, %v1170_v9  ;;  %v727_v31 = vadd.f32 %v725_v27, %v717_v24  ;;  %v728_v61 = vadd.f32 %v726_v28, %v718_v25 }
 0x3f9   : > { %v739_v32 = vrot.slane %v735_v29, 4  ;;  %v740_v33 = vrot.slane %v736_v30, 4 }
 0x3fb   : > { %v743_v1 = vadd.f32 %v739_v32, %v727_v31  ;;  %v744_v34 = vadd.f32 %v740_v33, %v728_v61 }
 0x3fd   : > { %v747_v35 = vcombine.low %v743_v1, %v744_v34 }
 0x3ff   : > { %749 = vst [vmem:[%s271_s15] sm:$0xff] %v747_v35 }
 0x400   : > { %943 = shalt.err (!%p940_p3)
}
 0x401   : > { %s944_s29 = scalar_lea.hbm %s763_s19, 128  ;;  %s948_s13 = scalar_lea.hbm %s1268_s7, 256 }
 0x402   : > { %p945_p4 = scmp.ne.s32.totalorder %s763_s19, %s944_s29  ;;  %p949_p9 = scmp.lt.s32.totalorder %s763_s19, %s1268_s7 }
 0x403   : > { %p950_p10 = scmp.lt.s32.totalorder %s948_s13, %s944_s29 }
 0x404   : > { %p946_p7 = pnand %p945_p4, %p1072_p5 }
 0x405   : > { %p951_p11 = por %p950_p10, %p949_p9 }
 0x406   : > { %p947_p8 = pneg %p946_p7 }
 0x408   : > { %p952_p12 = pnand %p951_p11, %p947_p8 }
 0x40a   : > { %955 = shalt.err (!%p952_p12)
}
 0x40b   : > { %878 = dma.vmem_to_hbm [thread:$0]  (%p1072_p5), %s766_s16, 128, %s763_s19, %s751_s20  }
 0x40c PF: > { %p884_p13 = scmp.ge.s32.totalorder %s990_s27, 2  ;;  %s777_s17 = sand.u32 1, %s978_s24  }
 0x40d   : > { %s778_s18 = scalar_lea.sflag [#allocation3], %s777_s17 }
 0x40e   : > { %p881_p0 = pnand %p884_p13, %p1076_p6 }
 0x410   : > { %p882_p1 = pneg %p881_p0 }
 0x412   : > { %973 = dma.done.wait (%p882_p1), %s778_s18, 128  }
 0x413   : > { %975 = vsyncadd (%p882_p1), %s778_s18, 4294967168  ;;  %p17_p2 = scmp.ge.s32.totalorder %s1059_s30, 4   ;;  %s1271_s24 = smov %s982_s25 }
 0x414   : > { %s1272_s25 = smov %s986_s26  ;;  %s1273_s26 = smov %s1070_s10 }
 0x415   : > { %s1274_s27 = smov %s1059_s30  ;;  %19 = sbr.rel (!%p17_p2) target bundleno = 3 (0x3), region = 83 }
 0x41a   :  { %783 = vsyncpa [#allocation3], 1 }
 0x41b   :  { %785 = vsyncpa [#allocation3 + $0x1], 1 }

</bundles_post_ra>
